<compile_context>
chip_gen: v6e
topology: v6e:2x2x1
jax: 0.10.0
libtpu: 0.0.40
codegen_flags: <defaults>
</compile_context>

<pallas_src>
import functools

import jax
import jax.numpy as jnp
from jax.experimental import pallas as pl
from jax.experimental.pallas import tpu as pltpu


def _round_up(x, m):
    return ((x + m - 1) // m) * m


def _cdiv(a, b):
    return -(-a // b)


def _focal_loss_kernel(*refs, gamma, alpha, has_w, has_cmask, has_full):
    """Elementwise focal loss on a lane-dense (TR, L) tile."""
    it = iter(refs)
    x_ref = next(it)                 # (TR, L) logits
    z_ref = next(it)                 # (TR, L) one-hot targets
    w_ref = e_ref = cm_ref = full_ref = None
    if has_w:
        w_ref = next(it)             # (TR, L//C) compact per-anchor weights, f32
        e_ref = next(it)             # (L//C, L)  0/1 lane-expansion matrix, bf16
    if has_cmask:
        cm_ref = next(it)            # (1, L)     class mask tiled along lanes, f32
    if has_full:
        full_ref = next(it)          # (TR, L)    full-size multiplier (rare fallback)
    o_ref = next(it)

    x = x_ref[...].astype(jnp.float32)
    z = z_ref[...].astype(jnp.float32)

    # One EUP exp shared by the stable CE term and the sigmoid.
    e = jnp.exp(-jnp.abs(x))                                   # exp(-|x|)
    # Numerically stable sigmoid cross entropy: max(x,0) - x*z + log(1+exp(-|x|))
    ce = jnp.maximum(x, 0.0) - x * z + jnp.log1p(e)

    inv = 1.0 / (1.0 + e)                                      # exact recip
    p = jnp.where(x >= 0.0, inv, e * inv)                      # sigmoid(x)
    one_minus_pt = 1.0 - (z * p + (1.0 - z) * (1.0 - p))       # 1 - p_t

    loss = ce
    if gamma:  # static Python scalar, matches `if self._gamma:` in the module
        g = float(gamma)
        if g.is_integer() and 1.0 <= g <= 4.0:
            mod = one_minus_pt
            for _ in range(int(g) - 1):                        # gamma=2 -> one VPU mul
                mod = mod * one_minus_pt
        else:
            mod = jnp.power(one_minus_pt, g)                   # non-integer gamma only
        loss = loss * mod
    if alpha is not None:
        loss = loss * (z * alpha + (1.0 - z) * (1.0 - alpha))

    if has_w:
        # Expand compact per-anchor weights (TR, L//C) -> (TR, L) on the MXU
        # via a 0/1 selection matrix.  The weight is split into three bf16
        # pieces so the selection stays exact to f32 precision (the MXU takes
        # bf16 operands; a single pass would round the weights to bf16).
        w = w_ref[...].astype(jnp.float32)
        em = e_ref[...]
        h0 = w.astype(jnp.bfloat16)
        r1 = w - h0.astype(jnp.float32)
        h1 = r1.astype(jnp.bfloat16)
        h2 = (r1 - h1.astype(jnp.float32)).astype(jnp.bfloat16)
        wexp = (jnp.dot(h0, em, preferred_element_type=jnp.float32)
                + jnp.dot(h1, em, preferred_element_type=jnp.float32)
                + jnp.dot(h2, em, preferred_element_type=jnp.float32))
        loss = loss * wexp
    if has_cmask:
        loss = loss * cm_ref[...].astype(jnp.float32)          # (1, L) row broadcast
    if has_full:
        loss = loss * full_ref[...].astype(jnp.float32)

    o_ref[...] = loss.astype(o_ref.dtype)


def sigmoid_focal_loss(prediction_tensor, target_tensor, weights=None,
                       class_indices=None, *, gamma=2.0, alpha=0.25):
    """JAX/Pallas equivalent of SigmoidFocalLoss.forward.

    Args:
      prediction_tensor: [B, A, C] float logits.
      target_tensor:     [B, A, C] one-hot targets.
      weights:           optional [B, A] per-anchor weights.
      class_indices:     optional 1-D int array of class indices to keep.
    Returns:
      [B, A, C] per-entry focal loss (unreduced).
    """
    B, A, C = prediction_tensor.shape
    dtype = prediction_tensor.dtype
    N = B * A * C

    itemsize = jnp.dtype(dtype).itemsize
    sub = max(8, 32 // max(1, itemsize))        # sublane multiple (8 f32, 16 bf16)

    # Lane width: multiple of 128; prefer C | L (enables the compact-weight
    # path) and L | N (avoids any padding copy).
    candidates = (512, 384, 256, 128)
    L = next((c for c in candidates if c % C == 0 and N % c == 0), None)
    if L is None:
        L = next((c for c in candidates if c % C == 0), None)
    if L is None:
        L = next((c for c in candidates if N % c == 0), 512)
    compact_ok = (L % C == 0)

    rows = _cdiv(N, L)
    # Tile rows: multiple of `sub`, capped at 512 (VMEM-safe on all gens),
    # aiming for >= 8 grid steps so each v7x TensorCore gets >= 4 pipelined
    # steps and v6e/v5e keep prefetch/writeback overlapped.
    TR = _round_up(max(1, _cdiv(rows, 8)), sub)
    TR = max(sub, min(TR, 512, _round_up(rows, sub)))
    rows_p = _round_up(rows, TR)
    Np = rows_p * L
    grid = (rows_p // TR,)

    def to2d(a):
        flat = a.reshape(-1)
        if Np != N:
            flat = jnp.pad(flat, (0, Np - N))
        return flat.reshape(rows_p, L)

    block = pl.BlockSpec((TR, L), lambda i: (i, 0))
    inputs = [to2d(prediction_tensor), to2d(target_tensor)]
    in_specs = [block, block]

    has_w = has_cmask = has_full = False
    if compact_ok:
        if weights is not None:
            has_w = True
            Lw = L // C
            NA, NAp = B * A, Np // C
            w_flat = jnp.broadcast_to(weights, (B, A)).reshape(-1).astype(jnp.float32)
            if NAp != NA:
                w_flat = jnp.pad(w_flat, (0, NAp - NA))
            w2 = w_flat.reshape(rows_p, Lw)
            expand = (jnp.arange(L, dtype=jnp.int32) // C
                      == jnp.arange(Lw, dtype=jnp.int32)[:, None]).astype(jnp.bfloat16)
            inputs += [w2, expand]
            in_specs += [pl.BlockSpec((TR, Lw), lambda i: (i, 0)),
                         pl.BlockSpec((Lw, L), lambda i: (0, 0))]   # resident
        if class_indices is not None:
            has_cmask = True
            cmask = jnp.zeros((C,), jnp.float32).at[jnp.asarray(class_indices)].set(1.0)
            inputs.append(jnp.tile(cmask, L // C).reshape(1, L))
            in_specs.append(pl.BlockSpec((1, L), lambda i: (0, 0)))  # resident
    elif weights is not None or class_indices is not None:
        # Rare fallback (C does not divide any lane-width candidate): stream a
        # single full-size multiplier.
        has_full = True
        if weights is None:
            w = jnp.ones((1, A, 1), jnp.float32)
        else:
            w = jnp.broadcast_to(weights, (B, A))[..., None].astype(jnp.float32)
        if class_indices is not None:
            cmask = jnp.zeros((C,), jnp.float32).at[jnp.asarray(class_indices)].set(1.0)
            w = w * cmask.reshape(1, 1, C)
        inputs.append(to2d(jnp.broadcast_to(w, (B, A, C))))
        in_specs.append(block)

    # NOTE: a further optimization (fusing an integer-label -> one-hot build
    # into the kernel) is possible but the module's forward takes one-hot
    # float targets, so the faithful API keeps the target stream.

    kernel = functools.partial(_focal_loss_kernel, gamma=gamma, alpha=alpha,
                               has_w=has_w, has_cmask=has_cmask, has_full=has_full)

    out2 = pl.pallas_call(
        kernel,
        out_shape=jax.ShapeDtypeStruct((rows_p, L), dtype),
        grid_spec=pltpu.PrefetchScalarGridSpec(
            num_scalar_prefetch=0,
            grid=grid,
            in_specs=in_specs,
            out_specs=block,
        ),
        compiler_params=pltpu.CompilerParams(
            dimension_semantics=("parallel",)),
    )(*inputs)

    out_flat = out2.reshape(-1)
    if Np != N:
        out_flat = out_flat[:N]
    return out_flat.reshape(B, A, C)


def _reference(prediction_tensor, target_tensor, weights=None,
               class_indices=None, gamma=2.0, alpha=0.25):
    B, A, C = prediction_tensor.shape
    if weights is not None:
        w = weights[..., None]
    else:
        w = jnp.ones((1, A, 1), prediction_tensor.dtype)
    if class_indices is not None:
        cm = jnp.zeros((C,), prediction_tensor.dtype).at[jnp.asarray(class_indices)].set(1.0)
        w = w * cm.reshape(1, 1, C)
    x, z = prediction_tensor, target_tensor
    ce = jnp.maximum(x, 0.0) - x * z + jnp.log1p(jnp.exp(-jnp.abs(x)))
    p = jax.nn.sigmoid(x)
    p_t = z * p + (1 - z) * (1 - p)
    mod = jnp.power(1.0 - p_t, gamma)
    aw = z * alpha + (1 - z) * (1 - alpha)
    return mod * aw * ce * w


if __name__ == "__main__":
    key = jax.random.PRNGKey(0)
    k1, k2, k3 = jax.random.split(key, 3)

    B, A, C = 2, 256, 8   # batch, num_anchors, num_classes
    logits = jax.random.normal(k1, (B, A, C), dtype=jnp.float32)
    labels = jax.random.randint(k2, (B, A), 0, C)
    targets = jax.nn.one_hot(labels, C, dtype=jnp.float32)
    weights = jax.random.uniform(k3, (B, A), dtype=jnp.float32)

    # case 1: weights only (compact per-anchor weight stream + MXU expansion)
    out1 = jax.block_until_ready(sigmoid_focal_loss(logits, targets, weights))
    ref1 = _reference(logits, targets, weights)
    assert out1.shape == (B, A, C)
    assert jnp.allclose(out1, ref1, atol=1e-5, rtol=1e-5)

    # case 2: weights + class_indices (adds the resident class-mask row)
    cls_idx = jnp.array([0, 2, 5], dtype=jnp.int32)
    out2 = jax.block_until_ready(
        sigmoid_focal_loss(logits, targets, weights, class_indices=cls_idx))
    ref2 = _reference(logits, targets, weights, class_indices=cls_idx)
    assert jnp.allclose(out2, ref2, atol=1e-5, rtol=1e-5)

    # case 3: no weights / no class mask (two-operand fast path, no multiply)
    out3 = jax.block_until_ready(sigmoid_focal_loss(logits, targets))
    ref3 = _reference(logits, targets)
    assert jnp.allclose(out3, ref3, atol=1e-5, rtol=1e-5)

    print("KERNEL_OK")
</pallas_src>

<mosaic_0001>
module attributes {stable_mosaic.version = 11 : i64} {
  func.func @_focal_loss_kernel(%arg0: i32, %arg1: memref<8x512xf32, #tpu.memory_space<vmem>>, %arg2: memref<8x512xf32, #tpu.memory_space<vmem>>, %arg3: memref<8x64xf32, #tpu.memory_space<vmem>>, %arg4: memref<64x512xbf16, #tpu.memory_space<vmem>>, %arg5: memref<8x512xf32, #tpu.memory_space<vmem>>) attributes {dimension_semantics = [#tpu.dimension_semantics<parallel>], iteration_bounds = array<i64: 1>, scalar_prefetch = 0 : i64, scratch_operands = 0 : i64, tpu.core_type = #tpu.core_type<tc>, window_params = [{transform_indices = @transform_0, window_bounds = array<i64: 8, 512>}, {transform_indices = @transform_1, window_bounds = array<i64: 8, 512>}, {transform_indices = @transform_2, window_bounds = array<i64: 8, 64>}, {pipeline_mode = #tpu.pipeline_mode<synchronous>, transform_indices = @transform_3, window_bounds = array<i64: 64, 512>}, {transform_indices = @transform_4, window_bounds = array<i64: 8, 512>}]} {
    %c0 = arith.constant 0 : index
    %c0_0 = arith.constant 0 : index
    %0 = vector.load %arg1[%c0, %c0_0] : memref<8x512xf32, #tpu.memory_space<vmem>>, vector<8x512xf32>
    %c0_1 = arith.constant 0 : index
    %c0_2 = arith.constant 0 : index
    %1 = vector.load %arg2[%c0_1, %c0_2] : memref<8x512xf32, #tpu.memory_space<vmem>>, vector<8x512xf32>
    %2 = math.absf %0 : vector<8x512xf32>
    %cst = arith.constant 0.000000e+00 : f32
    %3 = vector.broadcast %cst : f32 to vector<8x512xf32>
    %4 = arith.subf %3, %2 : vector<8x512xf32>
    %5 = math.exp %4 : vector<8x512xf32>
    %cst_3 = arith.constant 0.000000e+00 : f32
    %6 = vector.broadcast %cst_3 : f32 to vector<8x512xf32>
    %7 = arith.maximumf %0, %6 : vector<8x512xf32>
    %8 = arith.mulf %0, %1 : vector<8x512xf32>
    %9 = arith.subf %7, %8 : vector<8x512xf32>
    %10 = math.log1p %5 : vector<8x512xf32>
    %11 = arith.addf %9, %10 : vector<8x512xf32>
    %cst_4 = arith.constant 1.000000e+00 : f32
    %12 = vector.broadcast %cst_4 : f32 to vector<8x512xf32>
    %13 = arith.addf %12, %5 : vector<8x512xf32>
    %cst_5 = arith.constant 1.000000e+00 : f32
    %14 = vector.broadcast %cst_5 : f32 to vector<8x512xf32>
    %15 = arith.divf %14, %13 : vector<8x512xf32>
    %cst_6 = arith.constant 0.000000e+00 : f32
    %16 = vector.broadcast %cst_6 : f32 to vector<8x512xf32>
    %17 = arith.cmpf oge, %0, %16 : vector<8x512xf32>
    %18 = arith.mulf %5, %15 : vector<8x512xf32>
    %19 = arith.select %17, %15, %18 : vector<8x512xi1>, vector<8x512xf32>
    %20 = arith.mulf %1, %19 : vector<8x512xf32>
    %cst_7 = arith.constant 1.000000e+00 : f32
    %21 = vector.broadcast %cst_7 : f32 to vector<8x512xf32>
    %22 = arith.subf %21, %1 : vector<8x512xf32>
    %cst_8 = arith.constant 1.000000e+00 : f32
    %23 = vector.broadcast %cst_8 : f32 to vector<8x512xf32>
    %24 = arith.subf %23, %19 : vector<8x512xf32>
    %25 = arith.mulf %22, %24 : vector<8x512xf32>
    %26 = arith.addf %20, %25 : vector<8x512xf32>
    %cst_9 = arith.constant 1.000000e+00 : f32
    %27 = vector.broadcast %cst_9 : f32 to vector<8x512xf32>
    %28 = arith.subf %27, %26 : vector<8x512xf32>
    %29 = arith.mulf %28, %28 : vector<8x512xf32>
    %30 = arith.mulf %11, %29 : vector<8x512xf32>
    %cst_10 = arith.constant 2.500000e-01 : f32
    %31 = vector.broadcast %cst_10 : f32 to vector<8x512xf32>
    %32 = arith.mulf %1, %31 : vector<8x512xf32>
    %cst_11 = arith.constant 1.000000e+00 : f32
    %33 = vector.broadcast %cst_11 : f32 to vector<8x512xf32>
    %34 = arith.subf %33, %1 : vector<8x512xf32>
    %cst_12 = arith.constant 7.500000e-01 : f32
    %35 = vector.broadcast %cst_12 : f32 to vector<8x512xf32>
    %36 = arith.mulf %34, %35 : vector<8x512xf32>
    %37 = arith.addf %32, %36 : vector<8x512xf32>
    %38 = arith.mulf %30, %37 : vector<8x512xf32>
    %c0_13 = arith.constant 0 : index
    %c0_14 = arith.constant 0 : index
    %39 = vector.load %arg3[%c0_13, %c0_14] : memref<8x64xf32, #tpu.memory_space<vmem>>, vector<8x64xf32>
    %c0_15 = arith.constant 0 : index
    %c0_16 = arith.constant 0 : index
    %40 = vector.load %arg4[%c0_15, %c0_16] : memref<64x512xbf16, #tpu.memory_space<vmem>>, vector<64x512xbf16>
    %41 = arith.truncf %39 : vector<8x64xf32> to vector<8x64xbf16>
    %42 = arith.extf %41 : vector<8x64xbf16> to vector<8x64xf32>
    %43 = arith.subf %39, %42 : vector<8x64xf32>
    %44 = arith.truncf %43 : vector<8x64xf32> to vector<8x64xbf16>
    %45 = arith.extf %44 : vector<8x64xbf16> to vector<8x64xf32>
    %46 = arith.subf %43, %45 : vector<8x64xf32>
    %47 = arith.truncf %46 : vector<8x64xf32> to vector<8x64xbf16>
    %cst_17 = arith.constant dense<0.000000e+00> : vector<8x512xf32>
    %48 = tpu.matmul %41, %40, %cst_17 {dimension_numbers = #tpu.dot_dimension_numbers<[1], [0], [0], [1], [0, 0, 1, 1], [], []>} : vector<8x64xbf16>, vector<64x512xbf16>, vector<8x512xf32> -> vector<8x512xf32>
    %cst_18 = arith.constant dense<0.000000e+00> : vector<8x512xf32>
    %49 = tpu.matmul %44, %40, %cst_18 {dimension_numbers = #tpu.dot_dimension_numbers<[1], [0], [0], [1], [0, 0, 1, 1], [], []>} : vector<8x64xbf16>, vector<64x512xbf16>, vector<8x512xf32> -> vector<8x512xf32>
    %50 = arith.addf %48, %49 : vector<8x512xf32>
    %cst_19 = arith.constant dense<0.000000e+00> : vector<8x512xf32>
    %51 = tpu.matmul %47, %40, %cst_19 {dimension_numbers = #tpu.dot_dimension_numbers<[1], [0], [0], [1], [0, 0, 1, 1], [], []>} : vector<8x64xbf16>, vector<64x512xbf16>, vector<8x512xf32> -> vector<8x512xf32>
    %52 = arith.addf %50, %51 : vector<8x512xf32>
    %53 = arith.mulf %38, %52 : vector<8x512xf32>
    %c0_20 = arith.constant 0 : index
    %c0_21 = arith.constant 0 : index
    %54 = vector.load %arg5[%c0_20, %c0_21] : memref<8x512xf32, #tpu.memory_space<vmem>>, vector<8x512xf32>
    tpu.vector_store %arg5[%c0_20, %c0_21], %53 {strides = array<i32>} : memref<8x512xf32, #tpu.memory_space<vmem>>, vector<8x512xf32>,
    return
  }
  func.func @transform_0(%arg0: i32) -> (i32, i32) {
    %c0_i32 = arith.constant 0 : i32
    %c0_i32_0 = arith.constant 0 : i32
    return %arg0, %c0_i32 : i32, i32
  }
  func.func @transform_1(%arg0: i32) -> (i32, i32) {
    %c0_i32 = arith.constant 0 : i32
    %c0_i32_0 = arith.constant 0 : i32
    return %arg0, %c0_i32 : i32, i32
  }
  func.func @transform_2(%arg0: i32) -> (i32, i32) {
    %c0_i32 = arith.constant 0 : i32
    %c0_i32_0 = arith.constant 0 : i32
    return %arg0, %c0_i32 : i32, i32
  }
  func.func @transform_3(%arg0: i32) -> (i32, i32) {
    %c0_i32 = arith.constant 0 : i32
    %c0_i32_0 = arith.constant 0 : i32
    %c0_i32_1 = arith.constant 0 : i32
    return %c0_i32, %c0_i32_0 : i32, i32
  }
  func.func @transform_4(%arg0: i32) -> (i32, i32) {
    %c0_i32 = arith.constant 0 : i32
    %c0_i32_0 = arith.constant 0 : i32
    return %arg0, %c0_i32 : i32, i32
  }
}

</mosaic_0001>

<bundles_post_ra>
// kernel: tpu_custom_call.1
= control target key start
LH: loop header
LB: loop body
LE: loop exit
PB: predicated region body
PF: predicated region fallthrough
CT: control target
= control target key end

     0   :  { %9 = vsyncpa [#allocation3], 0  ;;  %s984_s0 = inlined_call_operand.hbm [shape: f32[8,512], index: 0, kind: input, shape index: {}]   ;;  %s985_s1 = inlined_call_operand.hbm [shape: f32[8,512], index: 1, kind: input, shape index: {}]   ;;  %s986_s2 = inlined_call_operand.hbm [shape: f32[8,64], index: 2, kind: input, shape index: {}]   ;;  %s987_s3 = inlined_call_operand.hbm [shape: bf16[64,512], index: 3, kind: input, shape index: {}]   ;;  %s988_s4 = inlined_call_operand.hbm [shape: f32[8,512], index: 4, kind: output, shape index: {}]  }
   0x1   :  { %10 = vsyncpa [#allocation6], 0 }
   0x2   :  { %11 = vsyncpa [#allocation9], 0 }
   0x3   :  { %12 = vsyncpa [#allocation4], 0  ;;  %s791_s15 = smov [#allocation5]   ;;  %s792_s17 = smov [#allocation2]  }
   0x4   :  { %s29_s16 = sshll.u32 %s791_s15, 4  ;;  %s19_s18 = sshll.u32 %s792_s17, 4  ;;  %s30_s16 = int_to_ptr.vmem [resolvable:$true] %s29_s16  ;;  %s20_s18 = int_to_ptr.vmem [resolvable:$true] %s19_s18 }
   0x5   :  { %s691_s19 = scalar_lea.vmem %s30_s16, 512  ;;  %p696_p1 = scmp.lt.s32.totalorder %s30_s16, %s30_s16 }
   0x6   :  { %p692_p0 = scmp.ne.s32.totalorder %s30_s16, %s691_s19  ;;  %p697_p2 = scmp.lt.s32.totalorder %s691_s19, %s691_s19 }
   0x8   :  { %p698_p3 = por %p697_p2, %p696_p1 }
   0xa   :  { %p699_p4 = pnand %p698_p3, %p692_p0 }
   0xc   :  { %702 = shalt.err (!%p699_p4)
}
   0xd   :  { %32 = dma.hbm_to_vmem [thread:$0]  %s985_s1, 512, %s30_s16, [#allocation6]  }
   0xe   :  { %s711_s22 = scalar_lea.vmem %s20_s18, 512  ;;  %p716_p6 = scmp.lt.s32.totalorder %s20_s18, %s20_s18 }
   0xf   :  { %p712_p5 = scmp.ne.s32.totalorder %s20_s18, %s711_s22  ;;  %p717_p7 = scmp.lt.s32.totalorder %s711_s22, %s711_s22 }
  0x11   :  { %p718_p8 = por %p717_p7, %p716_p6 }
  0x13   :  { %p719_p9 = pnand %p718_p8, %p712_p5 }
  0x15   :  { %722 = shalt.err (!%p719_p9)
}
  0x16   :  { %22 = dma.hbm_to_vmem [thread:$0]  %s984_s0, 512, %s20_s18, [#allocation3]  }
  0x17   :  { %s793_s25 = smov [#allocation7]   ;;  %s794_s27 = smov [#allocation8]  }
  0x18   :  { %s39_s26 = sshll.u32 %s793_s25, 4  ;;  %s48_s28 = sshll.u32 %s794_s27, 4  ;;  %s40_s26 = int_to_ptr.vmem [resolvable:$true] %s39_s26  ;;  %s49_s28 = int_to_ptr.vmem [resolvable:$true] %s48_s28 }
  0x19   :  { %s731_s29 = scalar_lea.vmem %s40_s26, 128  ;;  %p736_p11 = scmp.lt.s32.totalorder %s40_s26, %s40_s26 }
  0x1a   :  { %p732_p10 = scmp.ne.s32.totalorder %s40_s26, %s731_s29  ;;  %p737_p12 = scmp.lt.s32.totalorder %s731_s29, %s731_s29 }
  0x1c   :  { %p738_p13 = por %p737_p12, %p736_p11 }
  0x1e   :  { %p739_p0 = pnand %p738_p13, %p732_p10 }
  0x20   :  { %742 = shalt.err (!%p739_p0)
}
  0x21   :  { %42 = dma.hbm_to_vmem [thread:$0]  %s986_s2, 128, %s40_s26, [#allocation6]  }
  0x22   :  { %s751_s5 = scalar_lea.vmem %s49_s28, 2048  ;;  %p756_p2 = scmp.lt.s32.totalorder %s49_s28, %s49_s28 }
  0x23   :  { %p752_p1 = scmp.ne.s32.totalorder %s49_s28, %s751_s5  ;;  %p757_p3 = scmp.lt.s32.totalorder %s751_s5, %s751_s5 }
  0x25   :  { %p758_p4 = por %p757_p3, %p756_p2 }
  0x27   :  { %p759_p5 = pnand %p758_p4, %p752_p1 }
  0x29   :  { %762 = shalt.err (!%p759_p5)
}
  0x2a   :  { %s795_s0 = smov 256   ;;  %s796_s6 = smov 16  }
  0x2b   :  { %54 = dma.hbm_to_vmem [thread:$0]  %s987_s3, 2048, %s49_s28, [#allocation9], %s795_s0, %s795_s0, %s796_s6  }
  0x2c   :  { %783 = dma.done.wait [#allocation3], 512  }
  0x2d   :  { %784 = vsyncadd [#allocation3], 4294966784 }
  0x2e   :  { %785 = dma.done.wait [#allocation6], 640  }
  0x2f   :  { %786 = vsyncadd [#allocation6], 4294966656 }
  0x30   :  { %787 = dma.done.wait [#allocation9], 2048  }
  0x31   :  { %788 = vsyncadd [#allocation9], 4294965248  ;;  %v797_v0 = vmov 0   ;;  %v635_v1 = vld [vmem:[#allocation8 + $0x64] ss:$16 sps:$4 sm:$0xff]   ;;  %v216_v15 = vld [vmem:[#allocation7] sm:$0xff] }
  0x32   :  { %356 = vmatprep.mubr.bf16.mxu0 %v797_v0  ;;  %397 = vmatprep.mubr.bf16.mxu1 %v797_v0  ;;  %v637_v2 = vld [vmem:[#allocation8 + $0x6c] ss:$16 sps:$4 sm:$0xff]   ;;  %v639_v3 = vld [vmem:[#allocation8 + $0x60] ss:$16 sps:$4 sm:$0xff]   ;;  %v640_v4 = vld [vmem:[#allocation8 + $0x68] ss:$16 sps:$4 sm:$0xff]   ;;  %v233_v16 = vpack.c.bf16 %v216_v15, %v216_v15 }
  0x33   :  { %332 = vmatprep.subr.bf16.mxu0 %v635_v1  ;;  %373 = vmatprep.subr.bf16.mxu1 %v637_v2  ;;  %v641_v5 = vld [vmem:[#allocation8 + $0x44] ss:$16 sps:$4 sm:$0xff]   ;;  %v643_v6 = vld [vmem:[#allocation8 + $0x4c] ss:$16 sps:$4 sm:$0xff]   ;;  %v645_v7 = vld [vmem:[#allocation8 + $0x40] ss:$16 sps:$4 sm:$0xff]  }
  0x34   :  { %333 = vmatpush1.bf16.msra.mxu0 %v639_v3  ;;  %374 = vmatpush1.bf16.msra.mxu1 %v640_v4  ;;  %v646_v8 = vld [vmem:[#allocation8 + $0x48] ss:$16 sps:$4 sm:$0xff]   ;;  %v647_v9 = vld [vmem:[#allocation8 + $0x24] ss:$16 sps:$4 sm:$0xff]   ;;  %v649_v10 = vld [vmem:[#allocation8 + $0x2c] ss:$16 sps:$4 sm:$0xff]   ;;  %v234_v19 = vunpack.c.l.bf16 %v233_v16 }
  0x35   :  { %334 = vmatprep.subr.bf16.mxu0 %v641_v5  ;;  %375 = vmatprep.subr.bf16.mxu1 %v643_v6  ;;  %v651_v11 = vld [vmem:[#allocation8 + $0x20] ss:$16 sps:$4 sm:$0xff]   ;;  %v652_v12 = vld [vmem:[#allocation8 + $0x28] ss:$16 sps:$4 sm:$0xff]   ;;  %v653_v13 = vld [vmem:[#allocation8 + $0x4] ss:$16 sps:$4 sm:$0xff]  }
  0x36   :  { %v655_v14 = vld [vmem:[#allocation8 + $0xc] ss:$16 sps:$4 sm:$0xff]   ;;  %v657_v17 = vld [vmem:[#allocation8] ss:$16 sps:$4 sm:$0xff]   ;;  %v658_v18 = vld [vmem:[#allocation8 + $0x8] ss:$16 sps:$4 sm:$0xff]   ;;  %v235_v20 = vsub.f32 %v216_v15, %v234_v19 }
  0x37   :  { %vm320_vm0 = vcmask 523264   ;;  %v848_v25 = vld [vmem:[#allocation2] sm:$0xff]  ;;  %v851_v27 = vld [vmem:[#allocation2 + $0x10] sm:$0xff]  ;;  %v853_v28 = vld [vmem:[#allocation2 + $0x8] sm:$0xff]  ;;  %s798_s2 = smov [#allocation10]  }
  0x38   :  { %335 = vmatpush1.bf16.msra.mxu0 %v645_v7  ;;  %376 = vmatpush1.bf16.msra.mxu1 %v646_v8  ;;  %v236_v21 = vpack.c.bf16 %v235_v20, %v235_v20  ;;  %v76_v26 = vand.u32 2147483647, %v848_v25  ;;  %v855_v30 = vld [vmem:[#allocation2 + $0x18] sm:$0xff]  ;;  %v78_v31 = vand.u32 2147483647, %v851_v27  ;;  %vm156_vm1 = vcmp.ge.f32.partialorder %v848_v25, 0.0 }
  0x39   :  { %336 = vmatprep.subr.bf16.mxu0 %v647_v9  ;;  %377 = vmatprep.subr.bf16.mxu1 %v649_v10  ;;  %v77_v32 = vand.u32 2147483647, %v853_v28  ;;  %v79_v33 = vand.u32 2147483647, %v855_v30  ;;  %v874_v54 = vld [vmem:[#allocation5] sm:$0xff]  ;;  %vm158_vm2 = vcmp.ge.f32.partialorder %v851_v27, 0.0 }
  0x3a   :  { %v237_v22 = vunpack.c.l.bf16 %v236_v21  ;;  %v80_v29 = vsub.f32 0.0, %v76_v26  ;;  %v82_v35 = vsub.f32 0.0, %v78_v31  ;;  %v172_v59 = vsub.f32 1.0, %v874_v54  ;;  %s594_s3 = sshll.u32 %s798_s2, 4  ;;  %s595_s3 = int_to_ptr.vmem [resolvable:$true] %s594_s3 }
  0x3b   :  { %v81_v36 = vsub.f32 0.0, %v77_v32  ;;  %v83_v37 = vsub.f32 0.0, %v79_v33  ;;  %vm157_vm3 = vcmp.ge.f32.partialorder %v853_v28, 0.0  ;;  %vm159_vm4 = vcmp.ge.f32.partialorder %v855_v30, 0.0  ;;  %s763_s9 = scalar_lea.vmem %s595_s3, 512  ;;  %p768_p7 = scmp.lt.s32.totalorder %s595_s3, %s595_s3 }
  0x3c   :  { %337 = vmatpush1.bf16.msra.mxu0 %v651_v11  ;;  %378 = vmatpush1.bf16.msra.mxu1 %v652_v12  ;;  %v238_v23 = vsub.f32 %v235_v20, %v237_v22  ;;  %v84_v34 = vmul.f32 1.442695, %v80_v29  ;;  %v88_v38 = vmul.f32 1.442695, %v82_v35  ;;  %v94_v35 = vmax.f32 %v851_v27, 0.0  ;;  %p764_p6 = scmp.ne.s32.totalorder %s595_s3, %s763_s9  ;;  %p769_p8 = scmp.lt.s32.totalorder %s763_s9, %s763_s9 }
  0x3d   :  { %338 = vmatprep.subr.bf16.mxu0 %v653_v13  ;;  %379 = vmatprep.subr.bf16.mxu1 %v655_v14  ;;  %v86_v39 = vmul.f32 1.442695, %v81_v36  ;;  %v90_v40 = vmul.f32 1.442695, %v83_v37 }
  0x3e   :  { %v239_v24 = vpack.c.bf16 %v238_v23, %v238_v23  ;;  %659 = vpow2.f32 %v84_v34  ;;  %p770_p9 = por %p769_p8, %p768_p7 }
  0x3f   :  { %661 = vpow2.f32 %v88_v38 }
  0x40   :  { %339 = vmatpush1.bf16.msra.mxu0 %v657_v17  ;;  %380 = vmatpush1.bf16.msra.mxu1 %v658_v18  ;;  %663 = vpow2.f32 %v86_v39  ;;  %p771_p10 = pnand %p770_p9, %p764_p6 }
  0x41   :  { %417 = vmatprep.subr.bf16.mxu0 %v635_v1  ;;  %458 = vmatprep.subr.bf16.mxu1 %v637_v2  ;;  %665 = vpow2.f32 %v90_v40 }
  0x43   :  { %621 = vmatmul.mubr.msk.bf16.vlgmr.msra.gmra.mxu0 %vm320_vm0, %v236_v21  ;;  %622 = vmatmul.mubr.msk.bf16.vlgmr.msra.gmra.mxu1 %vm320_vm0, %v236_v21 }
  0x44   :  { %418 = vmatpush1.bf16.msra.mxu0 %v639_v3  ;;  %459 = vmatpush1.bf16.msra.mxu1 %v640_v4 }
  0x45   :  { %419 = vmatprep.subr.bf16.mxu0 %v641_v5  ;;  %460 = vmatprep.subr.bf16.mxu1 %v643_v6 }
  0x46   :  { %441 = vmatprep.mubr.bf16.mxu0 %v797_v0  ;;  %482 = vmatprep.mubr.bf16.mxu1 %v797_v0 }
  0x48   :  { %420 = vmatpush1.bf16.msra.mxu0 %v645_v7  ;;  %461 = vmatpush1.bf16.msra.mxu1 %v646_v8 }
  0x49   :  { %421 = vmatprep.subr.bf16.mxu0 %v647_v9  ;;  %462 = vmatprep.subr.bf16.mxu1 %v649_v10 }
  0x4b   :  { %v860_v41 = vpop.eup %659 }
  0x4c   :  { %422 = vmatpush1.bf16.msra.mxu0 %v651_v11  ;;  %463 = vmatpush1.bf16.msra.mxu1 %v652_v12  ;;  %v104_v42 = vadd.f32 1.0, %v860_v41  ;;  %v863_v43 = vpop.eup %661 }
  0x4d   :  { %423 = vmatprep.subr.bf16.mxu0 %v653_v13  ;;  %464 = vmatprep.subr.bf16.mxu1 %v655_v14  ;;  %v865_v44 = vpop.eup %663  ;;  %v122_v46 = vadd.f32 1.0, %v863_v43  ;;  %v128_v38 = vand.u32 2147483647, %v863_v43 }
  0x4e   :  { %v867_v45 = vpop.eup %665  ;;  %667 = vrcp.f32 %v104_v42  ;;  %v113_v47 = vadd.f32 1.0, %v865_v44  ;;  %v116_v21 = vmul.f32 -0.5, %v865_v44 }
  0x4f   :  { %v131_v48 = vadd.f32 1.0, %v867_v45  ;;  %669 = vrcp.f32 %v122_v46  ;;  %v134_v33 = vmul.f32 -0.5, %v867_v45  ;;  %vm935_vm6 = vcmp.lt.f32.partialorder %v128_v38, 0.0004427343 }
  0x50   :  { %424 = vmatpush1.bf16.msra.mxu0 %v657_v17  ;;  %465 = vmatpush1.bf16.msra.mxu1 %v658_v18  ;;  %671 = vrcp.f32 %v113_v47 }
  0x51   :  { %502 = vmatprep.subr.bf16.mxu0 %v635_v1  ;;  %543 = vmatprep.subr.bf16.mxu1 %v637_v2  ;;  %673 = vrcp.f32 %v131_v48  ;;  %v92_v1 = vmax.f32 %v848_v25, 0.0  ;;  %v96_v2 = vmul.f32 %v874_v54, %v848_v25 }
  0x52   :  { %675 = vlog2.f32 %v104_v42 }
  0x53   :  { %623 = vmatmul.mubr.msk.bf16.vlgmr.msra.gmra.mxu0 %vm320_vm0, %v233_v16  ;;  %624 = vmatmul.mubr.msk.bf16.vlgmr.msra.gmra.mxu1 %vm320_vm0, %v233_v16  ;;  %677 = vlog2.f32 %v122_v46  ;;  %v117_v46 = vadd.f32 1.0, %v116_v21 }
  0x54   :  { %503 = vmatpush1.bf16.msra.mxu0 %v639_v3  ;;  %544 = vmatpush1.bf16.msra.mxu1 %v640_v4  ;;  %679 = vlog2.f32 %v113_v47 }
  0x55   :  { %504 = vmatprep.subr.bf16.mxu0 %v641_v5  ;;  %545 = vmatprep.subr.bf16.mxu1 %v643_v6  ;;  %681 = vlog2.f32 %v131_v48  ;;  %v107_v5 = vmul.f32 -0.5, %v860_v41  ;;  %v110_v6 = vand.u32 2147483647, %v860_v41 }
  0x56   :  { %526 = vmatprep.mubr.bf16.mxu0 %v797_v0  ;;  %567 = vmatprep.mubr.bf16.mxu1 %v797_v0 }
  0x57   :  { %v108_v29 = vadd.f32 1.0, %v107_v5  ;;  %vm914_vm5 = vcmp.lt.f32.partialorder %v110_v6, 0.0004427343 }
  0x58   :  { %505 = vmatpush1.bf16.msra.mxu0 %v645_v7  ;;  %546 = vmatpush1.bf16.msra.mxu1 %v646_v8  ;;  %v896_v7 = vld [vmem:[#allocation5 + $0x10] sm:$0xff] }
  0x59   :  { %506 = vmatprep.subr.bf16.mxu0 %v647_v9  ;;  %547 = vmatprep.subr.bf16.mxu1 %v649_v10  ;;  %v174_v19 = vsub.f32 1.0, %v896_v7  ;;  %v98_v36 = vmul.f32 %v896_v7, %v851_v27 }
  0x5b   :  { %v668_v49 = vpop.eup %667  ;;  %v102_v21 = vsub.f32 %v94_v35, %v98_v36 }
  0x5c   :  { %507 = vmatpush1.bf16.msra.mxu0 %v651_v11  ;;  %548 = vmatpush1.bf16.msra.mxu1 %v652_v12  ;;  %v160_v50 = vmul.f32 %v668_v49, %v860_v41  ;;  %v670_v51 = vpop.eup %669  ;;  %v903_v11 = vld [vmem:[#allocation5 + $0x8] sm:$0xff] }
  0x5d   :  { %508 = vmatprep.subr.bf16.mxu0 %v653_v13  ;;  %549 = vmatprep.subr.bf16.mxu1 %v655_v14  ;;  %v672_v52 = vpop.eup %671  ;;  %v162_v58 = vmul.f32 %v670_v51, %v863_v43  ;;  %v905_v13 = vld [vmem:[#allocation5 + $0x18] sm:$0xff]  ;;  %v173_v23 = vsub.f32 1.0, %v903_v11 }
  0x5e   :  { %v674_v53 = vpop.eup %673  ;;  %v164_v55 = vsel %vm156_vm1, %v668_v49, %v160_v50  ;;  %v161_v61 = vmul.f32 %v672_v52, %v865_v44  ;;  %v175_v25 = vsub.f32 1.0, %v905_v13 }
  0x5f   :  { %v176_v60 = vsub.f32 1.0, %v164_v55  ;;  %v163_v62 = vmul.f32 %v674_v53, %v867_v45  ;;  %v166_v8 = vsel %vm158_vm2, %v670_v51, %v162_v58  ;;  %v168_v9 = vmul.f32 %v164_v55, %v874_v54  ;;  %v676_v22 = vpop.eup %675 }
  0x60   :  { %509 = vmatpush1.bf16.msra.mxu0 %v657_v17  ;;  %550 = vmatpush1.bf16.msra.mxu1 %v658_v18  ;;  %v165_v12 = vsel %vm157_vm3, %v672_v52, %v161_v61  ;;  %v125_v17 = vmul.f32 -0.5, %v863_v43  ;;  %v908_v18 = vsub.f32 %v92_v1, %v96_v2  ;;  %v178_v20 = vsub.f32 1.0, %v166_v8  ;;  %v678_v34 = vpop.eup %677 }
  0x61   :  { %v180_v10 = vmul.f32 %v176_v60, %v172_v59  ;;  %v167_v14 = vsel %vm159_vm4, %v674_v53, %v163_v62  ;;  %v106_v39 = vmul.f32 0.6931472, %v676_v22  ;;  %v170_v40 = vmul.f32 %v166_v8, %v896_v7  ;;  %v680_v47 = vpop.eup %679 }
  0x62   :  { %v179_v26 = vsub.f32 1.0, %v167_v14  ;;  %v126_v37 = vadd.f32 1.0, %v125_v17  ;;  %v182_v42 = vmul.f32 %v178_v20, %v174_v19  ;;  %v169_v48 = vmul.f32 %v165_v12, %v903_v11  ;;  %v682_v51 = vpop.eup %681 }
  0x63   :  { %625 = vmatmul.mubr.msk.bf16.vlgmr.msra.gmra.mxu0 %vm320_vm0, %v239_v24  ;;  %626 = vmatmul.mubr.msk.bf16.vlgmr.msra.gmra.mxu1 %vm320_vm0, %v239_v24  ;;  %v177_v24 = vsub.f32 1.0, %v165_v12  ;;  %v184_v32 = vadd.f32 %v180_v10, %v168_v9  ;;  %v171_v50 = vmul.f32 %v167_v14, %v905_v13  ;;  %v109_v52 = vmul.f32 %v860_v41, %v108_v29 }
  0x64   :  { %v183_v27 = vmul.f32 %v179_v26, %v175_v25  ;;  %v124_v53 = vmul.f32 0.6931472, %v678_v34  ;;  %v119_v55 = vand.u32 2147483647, %v865_v44  ;;  %v135_v58 = vadd.f32 1.0, %v134_v33 }
  0x65   :  { %v181_v49 = vmul.f32 %v177_v24, %v173_v23  ;;  %v127_v60 = vmul.f32 %v863_v43, %v126_v37  ;;  %v93_v62 = vmax.f32 %v853_v28, 0.0  ;;  %v137_v1 = vand.u32 2147483647, %v867_v45 }
  0x66   :  { %v186_v2 = vadd.f32 %v182_v42, %v170_v40  ;;  %v95_v41 = vmax.f32 %v855_v30, 0.0  ;;  %v118_v8 = vmul.f32 %v865_v44, %v117_v46  ;;  %v99_v9 = vmul.f32 %v905_v13, %v855_v30 }
  0x67   :  { %v185_v43 = vadd.f32 %v181_v49, %v169_v48  ;;  %v187_v10 = vadd.f32 %v183_v27, %v171_v50  ;;  %v188_v12 = vsub.f32 1.0, %v184_v32  ;;  %vm947_vm7 = vcmp.lt.f32.partialorder %v119_v55, 0.0004427343 }
  0x68   :  { %v112_v20 = vsel %vm914_vm5, %v109_v52, %v106_v39  ;;  %vm954_vm8 = vcmp.lt.f32.partialorder %v137_v1, 0.0004427343  ;;  %v200_v30 = vmul.f32 0.25, %v874_v54  ;;  %v130_v22 = vsel %vm935_vm6, %v127_v60, %v124_v53 }
  0x69   :  { %v190_v24 = vsub.f32 1.0, %v186_v2  ;;  %v189_v33 = vsub.f32 1.0, %v185_v43  ;;  %v103_v31 = vsub.f32 %v95_v41, %v99_v9  ;;  %v191_v34 = vsub.f32 1.0, %v187_v10 }
  0x6a   :  { %v140_v35 = vadd.f32 %v112_v20, %v908_v18  ;;  %v192_v36 = vmul.f32 %v188_v12, %v188_v12  ;;  %v204_v37 = vmul.f32 0.75, %v172_v59  ;;  %v142_v42 = vadd.f32 %v130_v22, %v102_v21 }
  0x6b   :  { %v202_v46 = vmul.f32 0.25, %v896_v7  ;;  %v201_v48 = vmul.f32 0.25, %v903_v11  ;;  %v194_v49 = vmul.f32 %v190_v24, %v190_v24  ;;  %v205_v18 = vmul.f32 0.75, %v173_v23 }
  0x6c   :  { %v203_v54 = vmul.f32 0.25, %v905_v13  ;;  %v193_v59 = vmul.f32 %v189_v33, %v189_v33  ;;  %v207_v52 = vmul.f32 0.75, %v175_v25  ;;  %v196_v53 = vmul.f32 %v192_v36, %v140_v35 }
  0x6d   :  { %v208_v55 = vadd.f32 %v204_v37, %v200_v30  ;;  %v209_v60 = vadd.f32 %v205_v18, %v201_v48 }
  0x6f   :  { %v212_v23 = vmul.f32 %v208_v55, %v196_v53 }
 0x103   :  { %v876_v56 = vpop.f32.mrf.mxu0  ;;  %v878_v57 = vpop.f32.mrf.mxu1 }
 0x105   :  { %v885_v63 = vpop.f32.mrf.mxu0  ;;  %v887_v0 = vpop.f32.mrf.mxu1 }
 0x107   :  { %v362_v3 = vpop.f32.mrf.mxu0  ;;  %v403_v4 = vpop.f32.mrf.mxu1 }
 0x108   :  { %v97_v3 = vmul.f32 %v903_v11, %v853_v28  ;;  %v115_v4 = vmul.f32 0.6931472, %v680_v47  ;;  %v136_v28 = vmul.f32 %v867_v45, %v135_v58  ;;  %v206_v47 = vmul.f32 0.75, %v174_v19 }
 0x109   :  { %v363_v15 = vpop.f32.mrf.mxu0  ;;  %v404_v16 = vpop.f32.mrf.mxu1  ;;  %v198_v58 = vmul.f32 %v194_v49, %v142_v42 }
 0x10a   :  { %v133_v15 = vmul.f32 0.6931472, %v682_v51  ;;  %v101_v26 = vsub.f32 %v93_v62, %v97_v3  ;;  %v121_v45 = vsel %vm947_vm7, %v118_v8, %v115_v4  ;;  %v195_v51 = vmul.f32 %v191_v34, %v191_v34 }
 0x10b   :  { %v210_v7 = vadd.f32 %v206_v47, %v202_v46  ;;  %v211_v62 = vadd.f32 %v207_v52, %v203_v54 }
 0x10c   :  { %v139_v38 = vsel %vm954_vm8, %v136_v28, %v133_v15  ;;  %v141_v50 = vadd.f32 %v121_v45, %v101_v26 }
 0x10d   :  { %v143_v27 = vadd.f32 %v139_v38, %v103_v31  ;;  %v214_v2 = vmul.f32 %v210_v7, %v198_v58 }
 0x10e   :  { %v197_v19 = vmul.f32 %v193_v59, %v141_v50 }
 0x10f   :  { %v199_v61 = vmul.f32 %v195_v51, %v143_v27 }
 0x110   :  { %v213_v41 = vmul.f32 %v209_v60, %v197_v19 }
 0x111   :  { %v215_v8 = vmul.f32 %v211_v62, %v199_v61 }
 0x113   :  { %v443_v5 = vpop.f32.mrf.mxu0  ;;  %v484_v6 = vpop.f32.mrf.mxu1 }
 0x114   :  { %v444_v1 = vadd.f32 %v443_v5, %v876_v56  ;;  %v485_v11 = vadd.f32 %v484_v6, %v878_v57 }
 0x115   :  { %v445_v16 = vpop.f32.mrf.mxu0  ;;  %v486_v17 = vpop.f32.mrf.mxu1 }
 0x116   :  { %v446_v13 = vadd.f32 %v445_v16, %v885_v63  ;;  %v487_v25 = vadd.f32 %v486_v17, %v887_v0 }
 0x117   :  { %v447_v29 = vpop.f32.mrf.mxu0  ;;  %v488_v32 = vpop.f32.mrf.mxu1 }
 0x119   :  { %v448_v39 = vpop.f32.mrf.mxu0  ;;  %v489_v40 = vpop.f32.mrf.mxu1 }
 0x123   :  { %v528_v3 = vpop.f32.mrf.mxu0  ;;  %v569_v4 = vpop.f32.mrf.mxu1 }
 0x124   :  { %v576_v43 = vadd.f32 %v528_v3, %v444_v1  ;;  %v578_v9 = vadd.f32 %v569_v4, %v485_v11 }
 0x125   :  { %v530_v10 = vpop.f32.mrf.mxu0  ;;  %v571_v12 = vpop.f32.mrf.mxu1 }
 0x126   :  { %v580_v14 = vmul.f32 %v576_v43, %v212_v23  ;;  %v582_v56 = vmul.f32 %v578_v9, %v214_v2  ;;  %v577_v5 = vadd.f32 %v530_v10, %v446_v13  ;;  %v579_v57 = vadd.f32 %v571_v12, %v487_v25 }
 0x127   :  { %v532_v6 = vpop.f32.mrf.mxu0  ;;  %v573_v15 = vpop.f32.mrf.mxu1 }
 0x128   :  { %584 = vst [vmem:[#allocation10] sm:$0xff] %v580_v14  ;;  %586 = vst [vmem:[#allocation10 + $0x10] sm:$0xff] %v582_v56  ;;  %v581_v28 = vmul.f32 %v577_v5, %v213_v41  ;;  %v583_v20 = vmul.f32 %v579_v57, %v215_v8 }
 0x129   :  { %v533_v63 = vpop.f32.mrf.mxu0  ;;  %v574_v16 = vpop.f32.mrf.mxu1 }
 0x12a   :  { %585 = vst [vmem:[#allocation10 + $0x8] sm:$0xff] %v581_v28  ;;  %587 = vst [vmem:[#allocation10 + $0x18] sm:$0xff] %v583_v20 }
 0x12b   :  { %774 = shalt.err (!%p771_p10)
}
 0x12c   :  { %597 = dma.vmem_to_hbm [thread:$0]  %s595_s3, 512, %s988_s4, [#allocation4]  }
 0x12d   :  { %789 = dma.done.wait [#allocation4], 512  }
 0x12e   :  { %790 = vsyncadd [#allocation4], 4294966784 }
 0x12f   :  { %601 = vsyncpa [#allocation3], 1 }
 0x130   :  { %602 = vsyncpa [#allocation6], 1 }
 0x131   :  { %603 = vsyncpa [#allocation9], 1 }
 0x132   :  { %604 = vsyncpa [#allocation4], 1 }

</bundles_post_ra>
